<compile_context>
chip_gen: v7x
topology: tpu7x:2x2x1
jax: 0.10.0
libtpu: 0.0.40
codegen_flags: <defaults>
</compile_context>

<pallas_src>
import jax
import jax.numpy as jnp
from jax.experimental import pallas as pl
from jax.experimental.pallas import tpu as pltpu


def _make_kernel(M, C, b, TD, *, K, norm, gamma, delta, n_groups, eps):
    inv_b = 1.0 / b

    def weight_fn(dist):
        r = 1.0 / (dist + eps)                      # exact; precision matters here
        if norm in ("L1", "L12"):
            return r
        if norm == "MCP":
            return jnp.maximum(r - 1.0 / gamma, eps)
        if norm == "Huber":
            return jnp.minimum(delta * r, 1.0)
        if norm == "HM":
            c = delta / (gamma - delta)
            return jnp.maximum(jnp.minimum(c * (gamma * r - 1.0), 1.0), eps)
        raise ValueError(f"unknown norm {norm}")

    def kernel(k_ref, x_ref, beta_ref, o_ref):
        k_all = k_ref[...]                          # (M, C)
        x_all = x_ref[...]                          # (C, TD)

        if norm == "L2":
            # sum_g kg @ xg == k @ x: one full-C MXU contraction.
            out = jnp.dot(k_all, x_all, preferred_element_type=jnp.float32)
        else:
            if norm == "L12":
                beta = beta_ref[0]                  # learnable scalar from SMEM
            out = jnp.zeros((M, TD), jnp.float32)
            for g in range(n_groups):               # static unroll over groups
                kg = k_all[:, g * b:(g + 1) * b]    # (M, b)
                xg = x_all[g * b:(g + 1) * b, :]    # (b, TD)
                x_k = xg[None, :, :] * kg[:, :, None]   # (M, b, TD)
                z0 = jnp.sum(x_k, axis=1)           # == kg @ xg, full-f32 path
                z = z0
                for _ in range(K):                  # static IRLS iterations
                    dist = jnp.abs(x_k - z[:, None, :] * inv_b)
                    w = weight_fn(dist)             # strictly positive (>= eps)
                    num = jnp.sum(w * x_k, axis=1)  # (M, TD)
                    den = jnp.maximum(jnp.sum(w, axis=1), 1e-12)
                    # fused F.normalize(w, p=1, dim) + weighted sum:
                    #   z = b * sum(w_norm * x_k) == b * sum(w * x_k) / sum(w)
                    z = (b * num) / den
                if norm == "L12":
                    z = beta * z0 + (1.0 - beta) * z
                out = out + z

        # TODO(synk): torch.cuda.empty_cache() is a CUDA allocator hint; no TPU equivalent (no-op).
        o_ref[...] = out.astype(o_ref.dtype)

    return kernel


def robust_sum_learn_pallas(k, x, beta, *, K=1, norm="L2", gamma=4.0,
                            delta=3.0, N=1, e=1e-3):
    """Pallas-TPU forward of RobustSumLearn. k:(M,C), x:(B,C,D), beta:(1,)."""
    M, C = k.shape
    B, C2, D = x.shape
    assert C == C2 and C % N == 0

    if norm == "L2":
        n_groups, b = 1, C          # fast path: single full-C contraction
    else:
        n_groups, b = N, C // N

    # Lane-dense D tile (multiple of 128 when possible).  When IRLS is active
    # the (M, b, TD) temporaries dominate VMEM, so pick the largest tile that
    # keeps roughly 4 of them under ~12 MiB.
    irls = norm != "L2"
    cands = [t for t in (512, 256, 128) if D % t == 0]
    if not cands:
        TD = D                      # fall back to whole-D tile
    elif not irls:
        TD = cands[0]
    else:
        TD = cands[-1]
        for t in cands:
            if 4 * M * b * t * 4 <= (12 << 20):
                TD = t
                break
    n_d = D // TD

    kernel = _make_kernel(M, C, b, TD, K=K, norm=norm, gamma=gamma, delta=delta,
                          n_groups=n_groups, eps=e)

    # Rough VMEM budget (double-buffered x tile + k + output + IRLS temps).
    irls_tmp = 0 if norm == "L2" else 4 * M * b * TD * 4
    est = 4 * (M * C + 2 * C * TD + 2 * M * TD) + irls_tmp
    vmem_limit = int(min(max(2 * est, 32 << 20), 64 << 20))

    beta = jnp.asarray(beta, jnp.float32).reshape((1,))

    return pl.pallas_call(
        kernel,
        grid=(B, n_d),
        in_specs=[
            # full k: (M, C), constant block -> DMA'd once
            pl.BlockSpec((M, C), lambda bi, dj: (0, 0)),
            # current (batch, D-tile) of x: (C, TD)
            pl.BlockSpec((None, C, TD), lambda bi, dj: (bi, 0, dj)),
            # learnable scalar beta in SMEM
            pl.BlockSpec(memory_space=pltpu.MemorySpace.SMEM),
        ],
        out_specs=pl.BlockSpec((None, M, TD), lambda bi, dj: (bi, 0, dj)),
        out_shape=jax.ShapeDtypeStruct((B, M, D), jnp.float32),
        compiler_params=pltpu.CompilerParams(
            dimension_semantics=("parallel", "parallel"),
            vmem_limit_bytes=vmem_limit),
    )(k, x, beta)


def robust_sum_learn_ref(k, x, beta, *, K=1, norm="L2", gamma=4.0,
                         delta=3.0, N=1, e=1e-3):
    """Pure-JAX reference mirroring the PyTorch module semantics (unfused)."""
    M, C = k.shape
    B, _, D = x.shape
    b = C // N
    total = jnp.zeros((B, M, D), jnp.float32)
    for i in range(N):
        kg = k[:, i * b:(i + 1) * b]
        xg = x[:, i * b:(i + 1) * b, :]
        z0 = jnp.einsum("mn,bnd->bmd", kg, xg,
                        precision=jax.lax.Precision.HIGHEST)
        if norm == "L2":
            z = z0
        else:
            x_k = xg[:, None, :, :] * kg[None, :, :, None]   # (B, M, b, D)
            z = z0
            for _ in range(K):
                dist = jnp.abs(x_k - z[:, :, None, :] / b)
                if norm in ("L1", "L12"):
                    w = 1.0 / (dist + e)
                elif norm == "MCP":
                    w = jnp.maximum(1.0 / (dist + e) - 1.0 / gamma, e)
                elif norm == "Huber":
                    w = jnp.minimum(delta / (dist + e), 1.0)
                elif norm == "HM":
                    w = delta / (gamma - delta) * (gamma / (dist + e) - 1.0)
                    w = jnp.maximum(jnp.minimum(w, 1.0), e)
                w_norm = w / jnp.maximum(
                    jnp.sum(jnp.abs(w), axis=2, keepdims=True), 1e-12)
                z = b * jnp.sum(w_norm * x_k, axis=2)
            if norm == "L12":
                z = beta[0] * z0 + (1.0 - beta[0]) * z
        total = total + z
    return total


if __name__ == "__main__":
    key = jax.random.PRNGKey(0)
    kk, kx = jax.random.split(key)
    B, M, C, D = 2, 8, 16, 128
    k = jax.random.normal(kk, (M, C), dtype=jnp.float32)
    x = jax.random.normal(kx, (B, C, D), dtype=jnp.float32)

    # Module default config: K=1, norm='L2', N=1, beta=0.0  -> z = k @ x
    beta0 = jnp.array([0.0], dtype=jnp.float32)
    out_l2 = jax.block_until_ready(robust_sum_learn_pallas(k, x, beta0))
    ref_l2 = robust_sum_learn_ref(k, x, beta0)
    assert out_l2.shape == (B, M, D)
    assert jnp.allclose(out_l2, ref_l2, atol=2e-2, rtol=2e-2), "L2 mismatch"

    # Non-trivial config exercising the iterative reweighting hot path (L12).
    beta1 = jnp.array([0.25], dtype=jnp.float32)
    cfg = dict(K=2, norm="L12", gamma=4.0, delta=3.0, N=2, e=1e-3)
    out_l12 = jax.block_until_ready(robust_sum_learn_pallas(k, x, beta1, **cfg))
    ref_l12 = robust_sum_learn_ref(k, x, beta1, **cfg)
    assert jnp.allclose(out_l12, ref_l12, atol=2e-2, rtol=2e-2), "L12 mismatch"

    # A clamped-weight branch (Huber) with multiple groups.
    cfg_h = dict(K=2, norm="Huber", gamma=4.0, delta=3.0, N=2, e=1e-3)
    out_h = jax.block_until_ready(robust_sum_learn_pallas(k, x, beta0, **cfg_h))
    ref_h = robust_sum_learn_ref(k, x, beta0, **cfg_h)
    assert jnp.allclose(out_h, ref_h, atol=2e-2, rtol=2e-2), "Huber mismatch"

    print("KERNEL_OK")
</pallas_src>

<mosaic_0001>
module attributes {stable_mosaic.version = 11 : i64} {
  func.func @kernel(%arg0: i32, %arg1: i32, %arg2: memref<8x16xf32, #tpu.memory_space<vmem>>, %arg3: memref<1x16x128xf32, #tpu.memory_space<vmem>>, %arg4: memref<1xf32, #tpu.memory_space<smem>>, %arg5: memref<1x8x128xf32, #tpu.memory_space<vmem>>) attributes {dimension_semantics = [#tpu.dimension_semantics<parallel>, #tpu.dimension_semantics<parallel>], iteration_bounds = array<i64: 2, 1>, scalar_prefetch = 0 : i64, scratch_operands = 0 : i64, tpu.core_type = #tpu.core_type<tc>, window_params = [{pipeline_mode = #tpu.pipeline_mode<synchronous>, transform_indices = @transform_0, window_bounds = array<i64: 8, 16>}, {transform_indices = @transform_1, window_bounds = array<i64: 1, 16, 128>}, {transform_indices = @transform_2, window_bounds = array<i64: 1>}, {transform_indices = @transform_3, window_bounds = array<i64: 1, 8, 128>}]} {
    %c0 = arith.constant 0 : index
    %c0_0 = arith.constant 0 : index
    %0 = vector.load %arg2[%c0, %c0_0] : memref<8x16xf32, #tpu.memory_space<vmem>>, vector<8x16xf32>
    %c0_1 = arith.constant 0 : index
    %c0_2 = arith.constant 0 : index
    %c0_3 = arith.constant 0 : index
    %1 = vector.load %arg3[%c0_1, %c0_2, %c0_3] : memref<1x16x128xf32, #tpu.memory_space<vmem>>, vector<1x16x128xf32>
    %2 = vector.shape_cast %1 : vector<1x16x128xf32> to vector<16x128xf32>
    %cst = arith.constant dense<0.000000e+00> : vector<8x128xf32>
    %3 = tpu.matmul %0, %2, %cst {dimension_numbers = #tpu.dot_dimension_numbers<[1], [0], [0], [1], [0, 0, 1, 1], [], []>} : vector<8x16xf32>, vector<16x128xf32>, vector<8x128xf32> -> vector<8x128xf32>
    %c0_4 = arith.constant 0 : index
    %c0_5 = arith.constant 0 : index
    %c0_6 = arith.constant 0 : index
    %4 = vector.load %arg5[%c0_4, %c0_5, %c0_6] : memref<1x8x128xf32, #tpu.memory_space<vmem>>, vector<1x8x128xf32>
    %5 = vector.shape_cast %4 : vector<1x8x128xf32> to vector<8x128xf32>
    %6 = vector.shape_cast %3 : vector<8x128xf32> to vector<1x8x128xf32>
    tpu.vector_store %arg5[%c0_4, %c0_5, %c0_6], %6 {strides = array<i32>} : memref<1x8x128xf32, #tpu.memory_space<vmem>>, vector<1x8x128xf32>,
    return
  }
  func.func @transform_0(%arg0: i32, %arg1: i32) -> (i32, i32) {
    %c0_i32 = arith.constant 0 : i32
    %c0_i32_0 = arith.constant 0 : i32
    %c0_i32_1 = arith.constant 0 : i32
    return %c0_i32, %c0_i32_0 : i32, i32
  }
  func.func @transform_1(%arg0: i32, %arg1: i32) -> (i32, i32, i32) {
    %c0_i32 = arith.constant 0 : i32
    %c0_i32_0 = arith.constant 0 : i32
    return %arg0, %c0_i32, %arg1 : i32, i32, i32
  }
  func.func @transform_2(%arg0: i32, %arg1: i32) -> i32 {
    %c0_i32 = arith.constant 0 : i32
    %c0_i32_0 = arith.constant 0 : i32
    return %c0_i32 : i32
  }
  func.func @transform_3(%arg0: i32, %arg1: i32) -> (i32, i32, i32) {
    %c0_i32 = arith.constant 0 : i32
    %c0_i32_0 = arith.constant 0 : i32
    return %arg0, %c0_i32, %arg1 : i32, i32, i32
  }
}

</mosaic_0001>

<bundles_post_ra>
// kernel: tpu_custom_call.1
= control target key start
LH: loop header
LB: loop body
LE: loop exit
PB: predicated region body
PF: predicated region fallthrough
CT: control target
= control target key end

     0   :  { %9 = vsyncpa [#allocation4], 0  ;;  %s909_s0 = inlined_call_operand.hbm [shape: f32[8,16], index: 0, kind: input, shape index: {}]   ;;  %s910_s1 = inlined_call_operand.hbm [shape: f32[2,16,128], index: 1, kind: input, shape index: {}]   ;;  %s911_s2 = inlined_call_operand.<no memory space> [shape: f32[1], index: 2, kind: input, shape index: {}]   ;;  %s912_s3 = inlined_call_operand.hbm [shape: f32[2,8,128], index: 3, kind: output, shape index: {}]  }
   0x1   :  { %10 = vsyncpa [#allocation7], 0 }
   0x2   :  { %12 = vsyncpa [#allocation7 + $0x1], 0 }
   0x3   :  { %13 = vsyncpa [#allocation5], 0 }
   0x4   :  { %15 = vsyncpa [#allocation5 + $0x1], 0  ;;  %s689_s12 = smov 0   ;;  %s691_s13 = smov 0  }
   0x5   :  { %s693_s14 = smov 0   ;;  %s695_s15 = smov 0  }
   0x6   :  { %s697_s16 = smov 0   ;;  %s699_s17 = smov 0  }
   0x7 LB: > { %s406_s2 = sadd.s32 4294967295, %s659_s17   ;;  %s407_s18 = sadd.s32 4294967294, %s659_s17   ;;  %s659_s17 = sphi %s699_s17, %s21_s17   ;;  %s655_s16 = sphi %s697_s16, %s940_s16   ;;  %s651_s15 = sphi %s695_s15, %s939_s15   ;;  %s647_s14 = sphi %s693_s14, %s938_s14   ;;  %s643_s13 = sphi %s691_s13, %s937_s13   ;;  %s639_s12 = sphi %s689_s12, %s936_s12  }
   0x8   : > { %s63_s19 = sadd.s32 1, %s647_s14  ;;  %p70_p0 = scmp.ne.s32.totalorder %s647_s14, %s643_s13 }
   0x9   : > { %p71_p1 = scmp.eq.s32.totalorder %s659_s17, 0  ;;  %p76_p2 = scmp.ne.s32.totalorder %s643_s13, %s639_s12 }
   0xa   : > { %p727_p3 = scmp.eq.s32.totalorder %s406_s2, 0  ;;  %p123_p4 = scmp.eq.s32.totalorder %s406_s2, 1 }
   0xb   : > { %p731_p5 = por %p71_p1, %p70_p0  ;;  %p129_p6 = scmp.eq.s32.totalorder %s407_s18, 1 }
   0xc   : > { %s919_s20 = scalar_select %p727_p3, 1, 0 }
   0xd   : > { %p737_p7 = por %p727_p3, %p76_p2  ;;  %p741_p8 = por %p123_p4, %p70_p0 }
   0xe   : > { %p745_p9 = por %p129_p6, %p76_p2  ;;  %p408_p10 = scmp.ge.s32.totalorder %s659_s17, 1 }
   0xf   : > { %s921_s22 = scalar_select %p737_p7, 1, 0 }
  0x10   : > { %s922_s23 = scalar_select %p741_p8, 1, 0 }
  0x11   : > { %s923_s24 = scalar_select %p745_p9, 1, 0 }
  0x12   : > { %p136_p11 = scmp.lt.s32.totalorder %s659_s17, 3  ;;  %s661_s26 = smov [#allocation3]  }
  0x13   : > { %s149_s27 = sshll.u32 %s661_s26, 4  ;;  %p458_p1 = scmp.lt.s32.totalorder %s659_s17, 2  ;;  %s150_s27 = int_to_ptr.vmem [resolvable:$true] %s149_s27 }
  0x14   : > { %p752_p13 = pnand %p408_p10, %p136_p11  ;;  %s33_s30 = sadd.s32 1, %s655_s16 }
  0x15   : > { %p761_p4 = pnand %p458_p1, %p731_p5  ;;  %p772_p6 = scmp.ge.s32.totalorder %s33_s30, 2 }
  0x16   : > { %s924_s25 = scalar_select %p752_p13, 1, 0 }
  0x17   : > { %p445_p0 = pneg %p752_p13  ;;  %s163_s5 = sand.u32 1, %s647_s14  }
  0x18   : > { %s925_s28 = scalar_select %p761_p4, 1, 0 }
  0x19   : > { %p767_p2 = pnand %p445_p0, %p727_p3  ;;  %s515_s8 = scalar_lea.hbm %s909_s0, 128 }
  0x1a   : > { %s927_s4 = scalar_select %p772_p6, 1, 0 }
  0x1b   : > { %p516_p5 = scmp.ne.s32.totalorder %s909_s0, %s515_s8  ;;  %p517_p10 = pneg %p767_p2 }
  0x1c   : > { %p522_p0 = scmp.lt.u32.totalorder %s515_s8, %s909_s0 }
  0x1d   : > { %p518_p11 = pnand %p517_p10, %p516_p5 }
  0x1f   : > { %p519_p1 = pneg %p518_p11 }
  0x21   : > { %p524_p12 = pnand %p522_p0, %p519_p1 }
  0x23   : > { %527 = shalt.err (!%p524_p12)
}
  0x24   : > { %s528_s18 = scalar_lea.vmem %s150_s27, 128  ;;  %p536_p3 = scmp.lt.s32.totalorder %s150_s27, %s150_s27 }
  0x25   : > { %p529_p9 = scmp.ne.s32.totalorder %s150_s27, %s528_s18  ;;  %p537_p13 = scmp.lt.s32.totalorder %s528_s18, %s528_s18 }
  0x27   : > { %p531_p8 = pnand %p529_p9, %p517_p10  ;;  %p538_p4 = por %p537_p13, %p536_p3 }
  0x29   : > { %p532_p7 = pneg %p531_p8 }
  0x2b   : > { %p539_p6 = pnand %p538_p4, %p532_p7 }
  0x2d   : > { %542 = shalt.err (!%p539_p6)
}
  0x2e   : > { %448 = dma.hbm_to_vmem [thread:$0]  (!%p767_p2), %s909_s0, 128, %s150_s27, [#allocation4]  }
  0x2f   : > { %p928_p9 = scmp.ne.s32.totalorder %s927_s4, 0  ;;  %s411_s6 = sshll.u32 %s163_s5, 4 }
  0x30   : > { %s423_s8 = sshll.u32 %s655_s16, 8  ;;  %s167_s11 = scalar_lea.vmem [#allocation6], %s411_s6 }
  0x31   : > { %s942_s30 = smov (%p928_p9, %s33_s30), 0  ;;  %s803_s10 = scalar_lea.hbm %s910_s1, %s423_s8 }
  0x32   : > { %s58_s7 = ssub.s32 %s655_s16, %s942_s30  ;;  %s175_s2 = sshll.u32 %s167_s11, 4  ;;  %s810_s2 = int_to_ptr.vmem [resolvable:$true] %s175_s2 }
  0x33   : > { %p61_p3 = scmp.eq.s32.totalorder %s58_s7, 0  ;;  %s812_s4 = scalar_lea.sflag [#allocation7], %s163_s5 }
  0x34   : > { %s543_s18 = scalar_lea.hbm %s803_s10, 256  ;;  %p929_p8 = scmp.ne.s32.totalorder %s925_s28, 0 }
  0x35   : > { %s808_s27 = scalar_select %p61_p3, %s647_s14, %s63_s19  }
  0x36   : > { %p544_p7 = scmp.ne.s32.totalorder %s803_s10, %s543_s18  ;;  %p545_p12 = pneg %p929_p8 }
  0x37   : > { %s548_s6 = scalar_lea.hbm %s910_s1, 512  ;;  %p549_p2 = scmp.lt.u32.totalorder %s803_s10, %s910_s1 }
  0x38   : > { %p546_p13 = pnand %p545_p12, %p544_p7  ;;  %p550_p6 = scmp.lt.u32.totalorder %s548_s6, %s543_s18 }
  0x39   : > { %p552_p10 = scmp.lt.u32.totalorder %s543_s18, %s803_s10 }
  0x3a   : > { %p547_p4 = pneg %p546_p13  ;;  %p551_p5 = por %p550_p6, %p549_p2 }
  0x3c   : > { %p553_p11 = por %p552_p10, %p551_p5 }
  0x3e   : > { %p554_p1 = pnand %p553_p11, %p547_p4 }
  0x40   : > { %557 = shalt.err (!%p554_p1)
}
  0x41   : > { %s558_s19 = scalar_lea.vmem %s810_s2, 256  ;;  %s662_s5 = smov [#allocation6]  }
  0x42   : > { %p559_p0 = scmp.ne.s32.totalorder %s810_s2, %s558_s19  ;;  %s563_s29 = sshll.u32 %s662_s5, 4  ;;  %s564_s29 = int_to_ptr.vmem [resolvable:$false] %s563_s29 }
  0x43   : > { %s565_s9 = scalar_lea.vmem %s564_s29, 512  ;;  %p566_p7 = scmp.lt.s32.totalorder %s810_s2, %s564_s29 }
  0x44   : > { %p561_p9 = pnand %p559_p0, %p545_p12  ;;  %p567_p13 = scmp.lt.s32.totalorder %s565_s9, %s558_s19 }
  0x46   : > { %p562_p3 = pneg %p561_p9  ;;  %p568_p2 = por %p567_p13, %p566_p7 }
  0x48   : > { %p569_p6 = pnand %p568_p2, %p562_p3 }
  0x4a   : > { %572 = shalt.err (!%p569_p6)
}
  0x4b   : > { %s663_s11 = smov 128   ;;  %s664_s18 = smov 8  }
  0x4c   : > { %452 = dma.hbm_to_vmem [thread:$0]  (!%p929_p8), %s803_s10, 256, %s810_s2, %s812_s4, %s663_s11, %s663_s11, %s664_s18  }
  0x4d   : > { %p930_p12 = scmp.ne.s32.totalorder %s924_s25, 0 }
  0x4e   : > { %p931_p4 = scmp.ne.s32.totalorder (!%p930_p12), %s919_s20, 0 }
  0x4f   : > { %187 = sbr.rel (%p930_p12) target bundleno = 323 (0x143), region = 32 }
  0x56   : > { %626 = dma.done.wait (%p931_p4), [#allocation4], 128  }
  0x57   : > { %628 = vsyncadd (%p931_p4), [#allocation4], 4294967168  ;;  %s847_s21 = sand.u32 1, %s643_s13   ;;  %p932_p5 = scmp.ne.s32.totalorder %s921_s22, 0 }
  0x58   : > { %s416_s26 = sshll.u32 %s847_s21, 4  ;;  %s194_s6 = scalar_lea.sflag [#allocation7], %s847_s21 }
  0x59   : > { %s197_s7 = scalar_lea.vmem [#allocation6], %s416_s26 }
  0x5a   : > { %630 = dma.done.wait (%p932_p5), %s194_s6, 256  }
  0x5b   : > { %632 = vsyncadd (%p932_p5), %s194_s6, 4294967040  ;;  %v665_v0 = vmov 0.0|0.0   ;;  %vm666_vm0 = vmmov 0   ;;  %v667_v1 = vmov 0.0   ;;  %v221_v2 = vld [vmem:[%s197_s7] sm:$0xff]  ;;  %v222_v3 = vld [vmem:[%s197_s7 + $0x8] sm:$0xff] }
  0x5c   : > { %434 = vmatprep.subr.bf16.mxu0 %v665_v0  ;;  %431 = vmatprep.mubr.msk.f32.mxu0 %vm666_vm0, %v667_v1  ;;  %v435_v4 = vpack.c.bf16 %v222_v3, %v221_v2  ;;  %v220_v5 = vld [vmem:[#allocation3] sm:$0xff]  ;;  %vm223_vm1 = vcmask 130048   ;;  %s417_s20 = sshll.u32 %s847_s21, 3  ;;  %s420_s28 = sshll.u32 %s651_s15, 7 }
  0x5d   : > { %s219_s25 = scalar_lea.vmem [#allocation8], %s417_s20  ;;  %s862_s4 = scalar_lea.hbm %s912_s3, %s420_s28 }
  0x5e   : > { %436 = vmatpush3.bf16.msra.mxu0 %v435_v4  ;;  %s313_s22 = sshll.u32 %s219_s25, 4  ;;  %s299_s8 = scalar_lea.sflag [#allocation5], %s847_s21  ;;  %s857_s22 = int_to_ptr.vmem [resolvable:$true] %s313_s22 }
  0x5f   : > { %s573_s19 = scalar_lea.vmem %s857_s22, 128  ;;  %p933_p10 = scmp.ne.s32.totalorder %s922_s23, 0 }
  0x60   : > { %p574_p8 = scmp.ne.s32.totalorder %s857_s22, %s573_s19  ;;  %s668_s15 = smov [#allocation8]  }
  0x61   : > { %432 = vmatmul.mubr.msk.f32.vlgmr.msra.gmra.mrb[0].mxu0 %vm223_vm1, %v220_v5  ;;  %s577_s5 = sshll.u32 %s668_s15, 4  ;;  %s578_s5 = int_to_ptr.vmem [resolvable:$false] %s577_s5 }
  0x62   : > { %p575_p11 = pnand %p574_p8, %p933_p10  ;;  %s579_s29 = scalar_lea.vmem %s578_s5, 256 }
  0x63   : > { %p580_p0 = scmp.lt.s32.totalorder %s857_s22, %s578_s5  ;;  %p581_p9 = scmp.lt.s32.totalorder %s579_s29, %s573_s19 }
  0x64   : > { %p576_p1 = pneg %p575_p11 }
  0x65   : > { %p582_p3 = por %p581_p9, %p580_p0 }
  0x67   : > { %p583_p7 = pnand %p582_p3, %p576_p1 }
 0x134   : > { %v293_v6 = vpop.f32.mrb[0].mxu0 }
 0x135   : > { %297 = vst [vmem:[%s219_s25] sm:$0xff] %v293_v6  ;;  %v433_v7 = vpop.f32.mrb[1].mxu0 }
 0x136   : > { %586 = shalt.err (!%p583_p7)
}
 0x137   : > { %s587_s9 = scalar_lea.hbm %s862_s4, 128  ;;  %s591_s21 = scalar_lea.hbm %s912_s3, 256 }
 0x138   : > { %p588_p13 = scmp.ne.s32.totalorder %s862_s4, %s587_s9  ;;  %p592_p12 = scmp.lt.u32.totalorder %s862_s4, %s912_s3 }
 0x139   : > { %p593_p4 = scmp.lt.u32.totalorder %s591_s21, %s587_s9  ;;  %p595_p8 = scmp.lt.u32.totalorder %s587_s9, %s862_s4 }
 0x13a   : > { %p589_p2 = pnand %p588_p13, %p933_p10 }
 0x13b   : > { %p594_p5 = por %p593_p4, %p592_p12 }
 0x13c   : > { %p590_p6 = pneg %p589_p2 }
 0x13d   : > { %p596_p11 = por %p595_p8, %p594_p5 }
 0x13f   : > { %p597_p1 = pnand %p596_p11, %p590_p6 }
 0x141   : > { %600 = shalt.err (!%p597_p1)
}
 0x142   : > { %443 = dma.vmem_to_hbm [thread:$0]  (%p933_p10), %s857_s22, 128, %s862_s4, %s299_s8  }
 0x143 PF: > { %s325_s7 = sand.u32 1, %s639_s12   ;;  %p934_p0 = scmp.ne.s32.totalorder %s923_s24, 0 }
 0x144   : > { %p935_p9 = scmp.ge.s32.totalorder %s659_s17, 2  ;;  %s326_s20 = scalar_lea.sflag [#allocation5], %s325_s7 }
 0x146   : > { %p454_p3 = pnand %p935_p9, %p934_p0 }
 0x148   : > { %634 = dma.done.wait (!%p454_p3), %s326_s20, 128  }
 0x149   : > { %636 = vsyncadd (!%p454_p3), %s326_s20, 4294967168  ;;  %s21_s17 = sadd.s32 1, %s659_s17   ;;  %s936_s12 = smov %s643_s13 }
 0x14a   : > { %p18_p7 = scmp.ge.s32.totalorder %s21_s17, 4   ;;  %s937_s13 = smov %s647_s14 }
 0x14b   : > { %s938_s14 = smov %s808_s27  ;;  %s939_s15 = smov %s655_s16 }
 0x14c   : > { %s940_s16 = smov %s942_s30  ;;  %20 = sbr.rel (!%p18_p7) target bundleno = 7 (0x7), region = 82 }
 0x153   :  { %331 = vsyncpa [#allocation4], 1 }
 0x154   :  { %333 = vsyncpa [#allocation4 + $0x1], 1 }
 0x155   :  { %334 = vsyncpa [#allocation7], 1 }
 0x156   :  { %336 = vsyncpa [#allocation7 + $0x1], 1 }
 0x157   :  { %337 = vsyncpa [#allocation5], 1 }
 0x158   :  { %339 = vsyncpa [#allocation5 + $0x1], 1 }

</bundles_post_ra>
